<compile_context>
chip_gen: v7x
topology: tpu7x:2x2x1
jax: 0.10.0
libtpu: 0.0.40
codegen_flags: <defaults>
</compile_context>

<pallas_src>
import math
from functools import partial

import jax
import jax.numpy as jnp
from jax import lax
from jax.experimental import pallas as pl
from jax.experimental.pallas import tpu as pltpu

LEAKY_SLOPE = 0.2
_PAD_ROWS = 8        # sublane-aligned zero-row padding around the staged fromRGB act
_OUT_LANES = 128     # lane-dense packed output width: [feat | decision | zeros]


def _leaky(v, slope):
    # slope in (0,1): max(v, slope*v) == LeakyReLU(v); 2 VALU ops.
    return jnp.maximum(v, slope * v)


# ---------------------------------------------------------------------------
# Single fused kernel: the entire DNet.forward (base module) per batch tile.
# ---------------------------------------------------------------------------
def _dnet_fused_kernel(x_ref, wrgb_ref, brgb_ref, wc_ref, bc_ref,
                       wl_ref, bl_ref, wd_ref, bd_ref,
                       out_ref,
                       h1_stage, h2_stage,
                       *, images_per_block, height, width, depth,
                       size_dec, out_lanes, pad_rows, slope):
    nb = images_per_block
    S = height * width
    NP = nb * S                       # pixel rows in this block (whole images)
    C = depth
    cd = h1_stage.dtype               # compute dtype for MXU operands

    # ---- fromRGB: 1x1 conv == per-pixel matmul, + LeakyReLU -----------------
    h1 = jnp.dot(x_ref[...], wrgb_ref[...], preferred_element_type=jnp.float32)
    h1 = _leaky(h1 + brgb_ref[...], slope)                        # (NP, C) f32

    # Stage h1 with pad_rows zero rows above/below so every 3x3 tap below is a
    # single statically-offset contiguous load (no zero-tile concatenates, no
    # cross-sublane shuffles on values).
    h1_stage[pl.ds(0, pad_rows), :] = jnp.zeros((pad_rows, C), cd)
    h1_stage[pl.ds(pad_rows + NP, pad_rows), :] = jnp.zeros((pad_rows, C), cd)
    h1_stage[pl.ds(pad_rows, NP), :] = h1.astype(cd)

    # Pixel coordinates per row; H and W are powers of two -> bit ops only.
    log2w = (width - 1).bit_length()
    row = lax.broadcasted_iota(jnp.int32, (NP, C), 0)
    xx = row & (width - 1)
    yy = (row >> log2w) & (height - 1)

    # ---- groupScaleZero[0]: 3x3 "same" conv + LeakyReLU ---------------------
    # On-chip im2col: 9 shifted views, masked where the tap falls outside the
    # image (this also kills any cross-image bleed along the flattened row
    # axis), lane-concatenated into ONE (NP, 9*C) patch tile -> ONE MXU matmul.
    cols = []
    for dy in range(3):
        for dx in range(3):
            oy, ox = dy - 1, dx - 1
            sh = oy * width + ox
            col = h1_stage[pl.ds(pad_rows + sh, NP), :]
            conds = []
            if oy < 0:
                conds.append(yy >= -oy)
            if oy > 0:
                conds.append(yy < height - oy)
            if ox < 0:
                conds.append(xx >= -ox)
            if ox > 0:
                conds.append(xx < width - ox)
            if conds:
                valid = conds[0]
                for extra in conds[1:]:
                    valid = valid & extra
                col = jnp.where(valid, col, jnp.zeros_like(col))
            cols.append(col)
    patches = jnp.concatenate(cols, axis=1)                       # (NP, 9*C)
    # TODO(synk): on v5e (128-wide MXU) the K=9*C contraction could be split
    # into a 128-aligned main pass plus a small tail; single dot on v6e/v7x.
    h2 = jnp.dot(patches, wc_ref[...], preferred_element_type=jnp.float32)
    h2 = _leaky(h2 + bc_ref[...], slope)                          # (NP, C) f32

    # ---- flatten: flat[n, s*C + c] = h2[n*S + s, c] --------------------------
    # (PyTorch's (C,H,W) flatten order is absorbed by the pre-permuted linear
    #  weight.)  Realized as S strided row-gathers concatenated along lanes:
    #  op count independent of batch size, lane-dense result, no masked stores.
    h2_stage[...] = h2.astype(cd)
    flat = jnp.concatenate(
        [h2_stage[pl.ds(s, nb, stride=S), :] for s in range(S)], axis=1)

    # ---- groupScaleZero[1]: linear + LeakyReLU -------------------------------
    f = jnp.dot(flat, wl_ref[...], preferred_element_type=jnp.float32)
    f = _leaky(f + bl_ref[...], slope)                            # (nb, C) f32

    # ---- decisionLayer: linear, no activation --------------------------------
    o = jnp.dot(f.astype(cd), wd_ref[...], preferred_element_type=jnp.float32)
    o = o + bd_ref[...]                                           # (nb, D)

    # ---- single lane-dense output slab: [feat | decision | zero pad] --------
    zpad = out_lanes - C - size_dec
    out_ref[...] = jnp.concatenate(
        [f, o, jnp.zeros((nb, zpad), jnp.float32)], axis=1).astype(out_ref.dtype)


# ---------------------------------------------------------------------------
# Deterministic parameter construction (mirrors DNet.__init__ shapes).
# ---------------------------------------------------------------------------
def init_dnet_params(key, depth_scale0=16, dim_input=3, size_decision=1):
    k1, k2, k3, k4 = jax.random.split(key, 4)
    p = {}
    # fromRGBLayers[0]: EqualizedConv2d(dimInput, depthScale0, 1)
    p["fromRGB_w"] = jax.random.normal(k1, (dim_input, depth_scale0), jnp.float32)
    p["fromRGB_b"] = jnp.zeros((depth_scale0,), jnp.float32)
    p["fromRGB_scale"] = math.sqrt(2.0 / (dim_input * 1 * 1))
    # groupScaleZero[0]: EqualizedConv2d(depthScale0, depthScale0, 3, padding=1)
    # stored as (3, 3, Cin, Cout) reshaped to (9*Cin, Cout); row = (dy*3+dx)*Cin+ci
    p["conv3_w"] = jax.random.normal(
        k2, (3, 3, depth_scale0, depth_scale0), jnp.float32
    ).reshape(9 * depth_scale0, depth_scale0)
    p["conv3_b"] = jnp.zeros((depth_scale0,), jnp.float32)
    p["conv3_scale"] = math.sqrt(2.0 / (depth_scale0 * 3 * 3))
    # groupScaleZero[1]: EqualizedLinear(depthScale0 * 16, depthScale0)
    # row index follows PyTorch's (C,H,W) flatten: c*16 + s
    p["lin_w"] = jax.random.normal(k3, (depth_scale0 * 16, depth_scale0), jnp.float32)
    p["lin_b"] = jnp.zeros((depth_scale0,), jnp.float32)
    p["lin_scale"] = math.sqrt(2.0 / (depth_scale0 * 16))
    # decisionLayer: EqualizedLinear(depthScale0, sizeDecisionLayer)
    p["dec_w"] = jax.random.normal(k4, (depth_scale0, size_decision), jnp.float32)
    p["dec_b"] = jnp.zeros((size_decision,), jnp.float32)
    p["dec_scale"] = math.sqrt(2.0 / depth_scale0)
    return p


def prepare_fused_params(p, depth_scale0=16, spatial=4, cin_pad=8):
    """Fold equalized-lR scales into W/b, pad fromRGB K to a sublane multiple,
    and pre-permute the linear weight from (c*S+s) to (s*C+c) row order."""
    C = depth_scale0
    S = spatial * spatial
    w_rgb = p["fromRGB_w"] * p["fromRGB_scale"]
    w_rgb = jnp.pad(w_rgb, ((0, cin_pad - w_rgb.shape[0]), (0, 0)))
    w_lin = (p["lin_w"] * p["lin_scale"]).reshape(C, S, C)          # [c, s, j]
    w_lin = jnp.transpose(w_lin, (1, 0, 2)).reshape(S * C, C)       # row = s*C + c
    return {
        "w_rgb": w_rgb,
        "b_rgb": (p["fromRGB_b"] * p["fromRGB_scale"]).reshape(1, C),
        "w_conv": p["conv3_w"] * p["conv3_scale"],
        "b_conv": (p["conv3_b"] * p["conv3_scale"]).reshape(1, C),
        "w_lin": w_lin,
        "b_lin": (p["lin_b"] * p["lin_scale"]).reshape(1, C),
        "w_dec": p["dec_w"] * p["dec_scale"],
        "b_dec": (p["dec_b"] * p["dec_scale"]).reshape(1, -1),
    }


def _pick_images_per_block(n, max_images=512):
    """Whole-image batch tile: equal to n, or a multiple of 8 that divides n."""
    if n <= max_images:
        return n
    best = n
    for nb in range(8, max_images + 1, 8):
        if n % nb == 0:
            best = nb
    return best


# ---------------------------------------------------------------------------
# DNet.forward (base module: scaleLayers empty, alpha == 0, no minibatch-stddev)
# ---------------------------------------------------------------------------
def dnet_forward(fp, x_nchw, get_feature=False, images_per_block=None,
                 compute_dtype=jnp.float32):
    N, Cin, H, W = x_nchw.shape
    assert H == 4 and W == 4, "scale-0 DNet expects 4x4 spatial input"
    S = H * W
    KPAD, C = fp["w_rgb"].shape
    D = fp["w_dec"].shape[1]
    out_lanes = max(_OUT_LANES, -(-(C + D) // 128) * 128)
    cd = jnp.dtype(compute_dtype)

    # Input staging: NCHW -> NHWC pixels-as-rows, channel dim zero-padded to KPAD.
    x2d = jnp.transpose(x_nchw, (0, 2, 3, 1)).reshape(N * S, Cin)
    x2d = jnp.pad(x2d, ((0, 0), (0, KPAD - Cin))).astype(cd)

    nb = _pick_images_per_block(N) if images_per_block is None else images_per_block
    assert N % nb == 0 and (nb == N or nb % 8 == 0), "bad images_per_block"
    grid = (N // nb,)
    NPb = nb * S

    w_rgb = fp["w_rgb"].astype(cd)
    w_conv = fp["w_conv"].astype(cd)
    w_lin = fp["w_lin"].astype(cd)
    w_dec = fp["w_dec"].astype(cd)
    b_rgb, b_conv, b_lin, b_dec = fp["b_rgb"], fp["b_conv"], fp["b_lin"], fp["b_dec"]

    # TODO(synk): multi-scale (addScale) path with avg-pool + alpha blending and
    # miniBatchStdDev are not active in the default-constructed module.
    kernel = partial(_dnet_fused_kernel, images_per_block=nb, height=H, width=W,
                     depth=C, size_dec=D, out_lanes=out_lanes,
                     pad_rows=_PAD_ROWS, slope=LEAKY_SLOPE)

    operands = (x2d, w_rgb, b_rgb, w_conv, b_conv, w_lin, b_lin, w_dec, b_dec)
    flops = int(2 * N * S * (KPAD * C + 9 * C * C) + 2 * N * (S * C * C + C * D))
    bytes_accessed = int(sum(int(a.size) * a.dtype.itemsize for a in operands)
                         + N * out_lanes * 4)

    const = lambda i: (0, 0)     # weights / biases stay VMEM-resident across steps
    out_pad = pl.pallas_call(
        kernel,
        out_shape=jax.ShapeDtypeStruct((N, out_lanes), jnp.float32),
        grid_spec=pltpu.PrefetchScalarGridSpec(
            num_scalar_prefetch=0,
            grid=grid,
            in_specs=[
                pl.BlockSpec((NPb, KPAD), lambda i: (i, 0)),   # input pixels
                pl.BlockSpec((KPAD, C), const),                # fromRGB w
                pl.BlockSpec((1, C), const),                   # fromRGB b
                pl.BlockSpec((9 * C, C), const),               # 3x3 conv w
                pl.BlockSpec((1, C), const),                   # 3x3 conv b
                pl.BlockSpec((S * C, C), const),               # linear w
                pl.BlockSpec((1, C), const),                   # linear b
                pl.BlockSpec((C, D), const),                   # decision w
                pl.BlockSpec((1, D), const),                   # decision b
            ],
            out_specs=pl.BlockSpec((nb, out_lanes), lambda i: (i, 0)),
            scratch_shapes=[
                pltpu.VMEM((NPb + 2 * _PAD_ROWS, C), cd),      # staged fromRGB act
                pltpu.VMEM((NPb, C), cd),                      # staged conv act
            ]),
        compiler_params=pltpu.CompilerParams(
            dimension_semantics=("parallel",)),
        cost_estimate=pl.CostEstimate(flops=flops, transcendentals=0,
                                      bytes_accessed=bytes_accessed),
    )(*operands)

    feat = out_pad[:, :C]
    out = out_pad[:, C:C + D]
    if get_feature:
        return out, feat
    return out


# ---------------------------------------------------------------------------
# Pure-JAX reference (unfused, scales applied after bias as in ConstrainedLayer)
# ---------------------------------------------------------------------------
def dnet_reference(p, x_nchw, get_feature=False):
    N, Cin, H, W = x_nchw.shape
    leaky = lambda v: jnp.where(v >= 0, v, LEAKY_SLOPE * v)
    x = jnp.transpose(x_nchw, (0, 2, 3, 1))
    h = (x.reshape(N * H * W, Cin) @ p["fromRGB_w"] + p["fromRGB_b"]) * p["fromRGB_scale"]
    h = leaky(h)
    C = h.shape[-1]
    h = h.reshape(N, H, W, C)
    xp = jnp.pad(h, ((0, 0), (1, 1), (1, 1), (0, 0)))
    cols = [xp[:, dy:dy + H, dx:dx + W, :] for dy in range(3) for dx in range(3)]
    patches = jnp.stack(cols, axis=3).reshape(N * H * W, 9 * C)
    h = (patches @ p["conv3_w"] + p["conv3_b"]) * p["conv3_scale"]
    h = leaky(h).reshape(N, H, W, C)
    feat = jnp.transpose(h, (0, 3, 1, 2)).reshape(N, C * H * W)   # PyTorch (C,H,W) flatten
    feat = leaky((feat @ p["lin_w"] + p["lin_b"]) * p["lin_scale"])
    out = (feat @ p["dec_w"] + p["dec_b"]) * p["dec_scale"]
    return (out, feat) if get_feature else out


if __name__ == "__main__":
    key = jax.random.PRNGKey(0)
    k_param, k_input = jax.random.split(key)

    depth_scale0, dim_input, size_decision = 16, 3, 1
    params = init_dnet_params(k_param, depth_scale0, dim_input, size_decision)
    fused_params = prepare_fused_params(params, depth_scale0, spatial=4)

    # scale-0 discriminator input: NCHW, 4x4 spatial (required by Linear(C*16, C))
    x = jax.random.normal(k_input, (2, dim_input, 4, 4), jnp.float32)

    fwd = jax.jit(lambda fp, xin: dnet_forward(fp, xin, get_feature=True))
    out, feat = fwd(fused_params, x)
    out = jax.block_until_ready(out)
    feat = jax.block_until_ready(feat)

    assert out.shape == (2, size_decision) and out.dtype == jnp.float32
    assert feat.shape == (2, depth_scale0)

    ref_out, ref_feat = dnet_reference(params, x, get_feature=True)
    assert jnp.allclose(out, ref_out, rtol=2e-4, atol=2e-4), (
        float(jnp.max(jnp.abs(out - ref_out))))
    assert jnp.allclose(feat, ref_feat, rtol=2e-4, atol=2e-4), (
        float(jnp.max(jnp.abs(feat - ref_feat))))

    print("KERNEL_OK")
</pallas_src>

<mosaic_0001>
module attributes {stable_mosaic.version = 11 : i64} {
  func.func @_dnet_fused_kernel(%arg0: i32, %arg1: memref<32x8xf32, #tpu.memory_space<vmem>>, %arg2: memref<8x16xf32, #tpu.memory_space<vmem>>, %arg3: memref<1x16xf32, #tpu.memory_space<vmem>>, %arg4: memref<144x16xf32, #tpu.memory_space<vmem>>, %arg5: memref<1x16xf32, #tpu.memory_space<vmem>>, %arg6: memref<256x16xf32, #tpu.memory_space<vmem>>, %arg7: memref<1x16xf32, #tpu.memory_space<vmem>>, %arg8: memref<16x1xf32, #tpu.memory_space<vmem>>, %arg9: memref<1x1xf32, #tpu.memory_space<vmem>>, %arg10: memref<2x128xf32, #tpu.memory_space<vmem>>, %arg11: memref<48x16xf32, #tpu.memory_space<vmem>>, %arg12: memref<32x16xf32, #tpu.memory_space<vmem>>) attributes {dimension_semantics = [#tpu.dimension_semantics<parallel>], iteration_bounds = array<i64: 1>, scalar_prefetch = 0 : i64, scratch_operands = 2 : i64, tpu.core_type = #tpu.core_type<tc>, window_params = [{transform_indices = @transform_0, window_bounds = array<i64: 32, 8>}, {pipeline_mode = #tpu.pipeline_mode<synchronous>, transform_indices = @transform_1, window_bounds = array<i64: 8, 16>}, {pipeline_mode = #tpu.pipeline_mode<synchronous>, transform_indices = @transform_2, window_bounds = array<i64: 1, 16>}, {pipeline_mode = #tpu.pipeline_mode<synchronous>, transform_indices = @transform_3, window_bounds = array<i64: 144, 16>}, {pipeline_mode = #tpu.pipeline_mode<synchronous>, transform_indices = @transform_4, window_bounds = array<i64: 1, 16>}, {pipeline_mode = #tpu.pipeline_mode<synchronous>, transform_indices = @transform_5, window_bounds = array<i64: 256, 16>}, {pipeline_mode = #tpu.pipeline_mode<synchronous>, transform_indices = @transform_6, window_bounds = array<i64: 1, 16>}, {pipeline_mode = #tpu.pipeline_mode<synchronous>, transform_indices = @transform_7, window_bounds = array<i64: 16, 1>}, {pipeline_mode = #tpu.pipeline_mode<synchronous>, transform_indices = @transform_8, window_bounds = array<i64: 1, 1>}, {transform_indices = @transform_9, window_bounds = array<i64: 2, 128>}]} {
    %c0 = arith.constant 0 : index
    %c0_0 = arith.constant 0 : index
    %0 = vector.load %arg1[%c0, %c0_0] : memref<32x8xf32, #tpu.memory_space<vmem>>, vector<32x8xf32>
    %c0_1 = arith.constant 0 : index
    %c0_2 = arith.constant 0 : index
    %1 = vector.load %arg2[%c0_1, %c0_2] : memref<8x16xf32, #tpu.memory_space<vmem>>, vector<8x16xf32>
    %cst = arith.constant dense<0.000000e+00> : vector<32x16xf32>
    %2 = tpu.matmul %0, %1, %cst {dimension_numbers = #tpu.dot_dimension_numbers<[1], [0], [0], [1], [0, 0, 1, 1], [], []>} : vector<32x8xf32>, vector<8x16xf32>, vector<32x16xf32> -> vector<32x16xf32>
    %c0_3 = arith.constant 0 : index
    %c0_4 = arith.constant 0 : index
    %3 = vector.load %arg3[%c0_3, %c0_4] : memref<1x16xf32, #tpu.memory_space<vmem>>, vector<1x16xf32>
    %4 = vector.broadcast %3 : vector<1x16xf32> to vector<32x16xf32>
    %5 = arith.addf %2, %4 : vector<32x16xf32>
    %cst_5 = arith.constant 2.000000e-01 : f32
    %6 = vector.broadcast %cst_5 : f32 to vector<32x16xf32>
    %7 = arith.mulf %6, %5 : vector<32x16xf32>
    %8 = arith.maximumf %5, %7 : vector<32x16xf32>
    %cst_6 = arith.constant 0.000000e+00 : f32
    %9 = vector.broadcast %cst_6 : f32 to vector<8x16xf32>
    %c0_7 = arith.constant 0 : index
    %c0_8 = arith.constant 0 : index
    %10 = vector.load %arg11[%c0_7, %c0_8] : memref<48x16xf32, #tpu.memory_space<vmem>>, vector<8x16xf32>
    tpu.vector_store %arg11[%c0_7, %c0_8], %9 {strides = array<i32>} : memref<48x16xf32, #tpu.memory_space<vmem>>, vector<8x16xf32>,
    %cst_9 = arith.constant 0.000000e+00 : f32
    %11 = vector.broadcast %cst_9 : f32 to vector<8x16xf32>
    %c40 = arith.constant 40 : index
    %c0_10 = arith.constant 0 : index
    %12 = vector.load %arg11[%c40, %c0_10] : memref<48x16xf32, #tpu.memory_space<vmem>>, vector<8x16xf32>
    tpu.vector_store %arg11[%c40, %c0_10], %11 {strides = array<i32>} : memref<48x16xf32, #tpu.memory_space<vmem>>, vector<8x16xf32>,
    %c8 = arith.constant 8 : index
    %c0_11 = arith.constant 0 : index
    %13 = vector.load %arg11[%c8, %c0_11] : memref<48x16xf32, #tpu.memory_space<vmem>>, vector<32x16xf32>
    tpu.vector_store %arg11[%c8, %c0_11], %8 {strides = array<i32>} : memref<48x16xf32, #tpu.memory_space<vmem>>, vector<32x16xf32>,
    %14 = tpu.iota {dimensions = array<i32: 0>} : vector<32x16xi32>
    %c3_i32 = arith.constant 3 : i32
    %15 = vector.broadcast %c3_i32 : i32 to vector<32x16xi32>
    %16 = arith.andi %14, %15 : vector<32x16xi32>
    %c2_i32 = arith.constant 2 : i32
    %17 = vector.broadcast %c2_i32 : i32 to vector<32x16xi32>
    %18 = arith.shrsi %14, %17 : vector<32x16xi32>
    %c3_i32_12 = arith.constant 3 : i32
    %19 = vector.broadcast %c3_i32_12 : i32 to vector<32x16xi32>
    %20 = arith.andi %18, %19 : vector<32x16xi32>
    %c3 = arith.constant 3 : index
    %c0_13 = arith.constant 0 : index
    %21 = vector.load %arg11[%c3, %c0_13] : memref<48x16xf32, #tpu.memory_space<vmem>>, vector<32x16xf32>
    %c1_i32 = arith.constant 1 : i32
    %22 = vector.broadcast %c1_i32 : i32 to vector<32x16xi32>
    %23 = arith.cmpi sge, %20, %22 : vector<32x16xi32>
    %c1_i32_14 = arith.constant 1 : i32
    %24 = vector.broadcast %c1_i32_14 : i32 to vector<32x16xi32>
    %25 = arith.cmpi sge, %16, %24 : vector<32x16xi32>
    %26 = arith.andi %23, %25 : vector<32x16xi1>
    %cst_15 = arith.constant 0.000000e+00 : f32
    %27 = vector.broadcast %cst_15 : f32 to vector<32x16xf32>
    %28 = arith.select %26, %21, %27 : vector<32x16xi1>, vector<32x16xf32>
    %c4 = arith.constant 4 : index
    %c0_16 = arith.constant 0 : index
    %29 = vector.load %arg11[%c4, %c0_16] : memref<48x16xf32, #tpu.memory_space<vmem>>, vector<32x16xf32>
    %c1_i32_17 = arith.constant 1 : i32
    %30 = vector.broadcast %c1_i32_17 : i32 to vector<32x16xi32>
    %31 = arith.cmpi sge, %20, %30 : vector<32x16xi32>
    %cst_18 = arith.constant 0.000000e+00 : f32
    %32 = vector.broadcast %cst_18 : f32 to vector<32x16xf32>
    %33 = arith.select %31, %29, %32 : vector<32x16xi1>, vector<32x16xf32>
    %c5 = arith.constant 5 : index
    %c0_19 = arith.constant 0 : index
    %34 = vector.load %arg11[%c5, %c0_19] : memref<48x16xf32, #tpu.memory_space<vmem>>, vector<32x16xf32>
    %c1_i32_20 = arith.constant 1 : i32
    %35 = vector.broadcast %c1_i32_20 : i32 to vector<32x16xi32>
    %36 = arith.cmpi sge, %20, %35 : vector<32x16xi32>
    %c3_i32_21 = arith.constant 3 : i32
    %37 = vector.broadcast %c3_i32_21 : i32 to vector<32x16xi32>
    %38 = arith.cmpi slt, %16, %37 : vector<32x16xi32>
    %39 = arith.andi %36, %38 : vector<32x16xi1>
    %cst_22 = arith.constant 0.000000e+00 : f32
    %40 = vector.broadcast %cst_22 : f32 to vector<32x16xf32>
    %41 = arith.select %39, %34, %40 : vector<32x16xi1>, vector<32x16xf32>
    %c7 = arith.constant 7 : index
    %c0_23 = arith.constant 0 : index
    %42 = vector.load %arg11[%c7, %c0_23] : memref<48x16xf32, #tpu.memory_space<vmem>>, vector<32x16xf32>
    %c1_i32_24 = arith.constant 1 : i32
    %43 = vector.broadcast %c1_i32_24 : i32 to vector<32x16xi32>
    %44 = arith.cmpi sge, %16, %43 : vector<32x16xi32>
    %cst_25 = arith.constant 0.000000e+00 : f32
    %45 = vector.broadcast %cst_25 : f32 to vector<32x16xf32>
    %46 = arith.select %44, %42, %45 : vector<32x16xi1>, vector<32x16xf32>
    %c8_26 = arith.constant 8 : index
    %c0_27 = arith.constant 0 : index
    %47 = vector.load %arg11[%c8_26, %c0_27] : memref<48x16xf32, #tpu.memory_space<vmem>>, vector<32x16xf32>
    %c9 = arith.constant 9 : index
    %c0_28 = arith.constant 0 : index
    %48 = vector.load %arg11[%c9, %c0_28] : memref<48x16xf32, #tpu.memory_space<vmem>>, vector<32x16xf32>
    %c3_i32_29 = arith.constant 3 : i32
    %49 = vector.broadcast %c3_i32_29 : i32 to vector<32x16xi32>
    %50 = arith.cmpi slt, %16, %49 : vector<32x16xi32>
    %cst_30 = arith.constant 0.000000e+00 : f32
    %51 = vector.broadcast %cst_30 : f32 to vector<32x16xf32>
    %52 = arith.select %50, %48, %51 : vector<32x16xi1>, vector<32x16xf32>
    %c11 = arith.constant 11 : index
    %c0_31 = arith.constant 0 : index
    %53 = vector.load %arg11[%c11, %c0_31] : memref<48x16xf32, #tpu.memory_space<vmem>>, vector<32x16xf32>
    %c3_i32_32 = arith.constant 3 : i32
    %54 = vector.broadcast %c3_i32_32 : i32 to vector<32x16xi32>
    %55 = arith.cmpi slt, %20, %54 : vector<32x16xi32>
    %c1_i32_33 = arith.constant 1 : i32
    %56 = vector.broadcast %c1_i32_33 : i32 to vector<32x16xi32>
    %57 = arith.cmpi sge, %16, %56 : vector<32x16xi32>
    %58 = arith.andi %55, %57 : vector<32x16xi1>
    %cst_34 = arith.constant 0.000000e+00 : f32
    %59 = vector.broadcast %cst_34 : f32 to vector<32x16xf32>
    %60 = arith.select %58, %53, %59 : vector<32x16xi1>, vector<32x16xf32>
    %c12 = arith.constant 12 : index
    %c0_35 = arith.constant 0 : index
    %61 = vector.load %arg11[%c12, %c0_35] : memref<48x16xf32, #tpu.memory_space<vmem>>, vector<32x16xf32>
    %c3_i32_36 = arith.constant 3 : i32
    %62 = vector.broadcast %c3_i32_36 : i32 to vector<32x16xi32>
    %63 = arith.cmpi slt, %20, %62 : vector<32x16xi32>
    %cst_37 = arith.constant 0.000000e+00 : f32
    %64 = vector.broadcast %cst_37 : f32 to vector<32x16xf32>
    %65 = arith.select %63, %61, %64 : vector<32x16xi1>, vector<32x16xf32>
    %c13 = arith.constant 13 : index
    %c0_38 = arith.constant 0 : index
    %66 = vector.load %arg11[%c13, %c0_38] : memref<48x16xf32, #tpu.memory_space<vmem>>, vector<32x16xf32>
    %c3_i32_39 = arith.constant 3 : i32
    %67 = vector.broadcast %c3_i32_39 : i32 to vector<32x16xi32>
    %68 = arith.cmpi slt, %20, %67 : vector<32x16xi32>
    %c3_i32_40 = arith.constant 3 : i32
    %69 = vector.broadcast %c3_i32_40 : i32 to vector<32x16xi32>
    %70 = arith.cmpi slt, %16, %69 : vector<32x16xi32>
    %71 = arith.andi %68, %70 : vector<32x16xi1>
    %cst_41 = arith.constant 0.000000e+00 : f32
    %72 = vector.broadcast %cst_41 : f32 to vector<32x16xf32>
    %73 = arith.select %71, %66, %72 : vector<32x16xi1>, vector<32x16xf32>
    %74 = tpu.concatenate %28, %33, %41, %46, %47, %52, %60, %65, %73 in 1 : vector<32x16xf32>, vector<32x16xf32>, vector<32x16xf32>, vector<32x16xf32>, vector<32x16xf32>, vector<32x16xf32>, vector<32x16xf32>, vector<32x16xf32>, vector<32x16xf32> -> vector<32x144xf32>
    %c0_42 = arith.constant 0 : index
    %c0_43 = arith.constant 0 : index
    %75 = vector.load %arg4[%c0_42, %c0_43] : memref<144x16xf32, #tpu.memory_space<vmem>>, vector<144x16xf32>
    %cst_44 = arith.constant dense<0.000000e+00> : vector<32x16xf32>
    %76 = tpu.matmul %74, %75, %cst_44 {dimension_numbers = #tpu.dot_dimension_numbers<[1], [0], [0], [1], [0, 0, 1, 1], [], []>} : vector<32x144xf32>, vector<144x16xf32>, vector<32x16xf32> -> vector<32x16xf32>
    %c0_45 = arith.constant 0 : index
    %c0_46 = arith.constant 0 : index
    %77 = vector.load %arg5[%c0_45, %c0_46] : memref<1x16xf32, #tpu.memory_space<vmem>>, vector<1x16xf32>
    %78 = vector.broadcast %77 : vector<1x16xf32> to vector<32x16xf32>
    %79 = arith.addf %76, %78 : vector<32x16xf32>
    %cst_47 = arith.constant 2.000000e-01 : f32
    %80 = vector.broadcast %cst_47 : f32 to vector<32x16xf32>
    %81 = arith.mulf %80, %79 : vector<32x16xf32>
    %82 = arith.maximumf %79, %81 : vector<32x16xf32>
    %c0_48 = arith.constant 0 : index
    %c0_49 = arith.constant 0 : index
    %83 = vector.load %arg12[%c0_48, %c0_49] : memref<32x16xf32, #tpu.memory_space<vmem>>, vector<32x16xf32>
    tpu.vector_store %arg12[%c0_48, %c0_49], %82 {strides = array<i32>} : memref<32x16xf32, #tpu.memory_space<vmem>>, vector<32x16xf32>,
    %c0_50 = arith.constant 0 : index
    %c0_51 = arith.constant 0 : index
    %84 = tpu.strided_load %arg12[%c0_50, %c0_51] {strides = array<i32: 16, 1>} : memref<32x16xf32, #tpu.memory_space<vmem>>, vector<2x16xf32>
    %c1 = arith.constant 1 : index
    %c0_52 = arith.constant 0 : index
    %85 = tpu.strided_load %arg12[%c1, %c0_52] {strides = array<i32: 16, 1>} : memref<32x16xf32, #tpu.memory_space<vmem>>, vector<2x16xf32>
    %c2 = arith.constant 2 : index
    %c0_53 = arith.constant 0 : index
    %86 = tpu.strided_load %arg12[%c2, %c0_53] {strides = array<i32: 16, 1>} : memref<32x16xf32, #tpu.memory_space<vmem>>, vector<2x16xf32>
    %c3_54 = arith.constant 3 : index
    %c0_55 = arith.constant 0 : index
    %87 = tpu.strided_load %arg12[%c3_54, %c0_55] {strides = array<i32: 16, 1>} : memref<32x16xf32, #tpu.memory_space<vmem>>, vector<2x16xf32>
    %c4_56 = arith.constant 4 : index
    %c0_57 = arith.constant 0 : index
    %88 = tpu.strided_load %arg12[%c4_56, %c0_57] {strides = array<i32: 16, 1>} : memref<32x16xf32, #tpu.memory_space<vmem>>, vector<2x16xf32>
    %c5_58 = arith.constant 5 : index
    %c0_59 = arith.constant 0 : index
    %89 = tpu.strided_load %arg12[%c5_58, %c0_59] {strides = array<i32: 16, 1>} : memref<32x16xf32, #tpu.memory_space<vmem>>, vector<2x16xf32>
    %c6 = arith.constant 6 : index
    %c0_60 = arith.constant 0 : index
    %90 = tpu.strided_load %arg12[%c6, %c0_60] {strides = array<i32: 16, 1>} : memref<32x16xf32, #tpu.memory_space<vmem>>, vector<2x16xf32>
    %c7_61 = arith.constant 7 : index
    %c0_62 = arith.constant 0 : index
    %91 = tpu.strided_load %arg12[%c7_61, %c0_62] {strides = array<i32: 16, 1>} : memref<32x16xf32, #tpu.memory_space<vmem>>, vector<2x16xf32>
    %c8_63 = arith.constant 8 : index
    %c0_64 = arith.constant 0 : index
    %92 = tpu.strided_load %arg12[%c8_63, %c0_64] {strides = array<i32: 16, 1>} : memref<32x16xf32, #tpu.memory_space<vmem>>, vector<2x16xf32>
    %c9_65 = arith.constant 9 : index
    %c0_66 = arith.constant 0 : index
    %93 = tpu.strided_load %arg12[%c9_65, %c0_66] {strides = array<i32: 16, 1>} : memref<32x16xf32, #tpu.memory_space<vmem>>, vector<2x16xf32>
    %c10 = arith.constant 10 : index
    %c0_67 = arith.constant 0 : index
    %94 = tpu.strided_load %arg12[%c10, %c0_67] {strides = array<i32: 16, 1>} : memref<32x16xf32, #tpu.memory_space<vmem>>, vector<2x16xf32>
    %c11_68 = arith.constant 11 : index
    %c0_69 = arith.constant 0 : index
    %95 = tpu.strided_load %arg12[%c11_68, %c0_69] {strides = array<i32: 16, 1>} : memref<32x16xf32, #tpu.memory_space<vmem>>, vector<2x16xf32>
    %c12_70 = arith.constant 12 : index
    %c0_71 = arith.constant 0 : index
    %96 = tpu.strided_load %arg12[%c12_70, %c0_71] {strides = array<i32: 16, 1>} : memref<32x16xf32, #tpu.memory_space<vmem>>, vector<2x16xf32>
    %c13_72 = arith.constant 13 : index
    %c0_73 = arith.constant 0 : index
    %97 = tpu.strided_load %arg12[%c13_72, %c0_73] {strides = array<i32: 16, 1>} : memref<32x16xf32, #tpu.memory_space<vmem>>, vector<2x16xf32>
    %c14 = arith.constant 14 : index
    %c0_74 = arith.constant 0 : index
    %98 = tpu.strided_load %arg12[%c14, %c0_74] {strides = array<i32: 16, 1>} : memref<32x16xf32, #tpu.memory_space<vmem>>, vector<2x16xf32>
    %c15 = arith.constant 15 : index
    %c0_75 = arith.constant 0 : index
    %99 = tpu.strided_load %arg12[%c15, %c0_75] {strides = array<i32: 16, 1>} : memref<32x16xf32, #tpu.memory_space<vmem>>, vector<2x16xf32>
    %100 = tpu.concatenate %84, %85, %86, %87, %88, %89, %90, %91, %92, %93, %94, %95, %96, %97, %98, %99 in 1 : vector<2x16xf32>, vector<2x16xf32>, vector<2x16xf32>, vector<2x16xf32>, vector<2x16xf32>, vector<2x16xf32>, vector<2x16xf32>, vector<2x16xf32>, vector<2x16xf32>, vector<2x16xf32>, vector<2x16xf32>, vector<2x16xf32>, vector<2x16xf32>, vector<2x16xf32>, vector<2x16xf32>, vector<2x16xf32> -> vector<2x256xf32>
    %c0_76 = arith.constant 0 : index
    %c0_77 = arith.constant 0 : index
    %101 = vector.load %arg6[%c0_76, %c0_77] : memref<256x16xf32, #tpu.memory_space<vmem>>, vector<256x16xf32>
    %cst_78 = arith.constant dense<0.000000e+00> : vector<2x16xf32>
    %102 = tpu.matmul %100, %101, %cst_78 {dimension_numbers = #tpu.dot_dimension_numbers<[1], [0], [0], [1], [0, 0, 1, 1], [], []>} : vector<2x256xf32>, vector<256x16xf32>, vector<2x16xf32> -> vector<2x16xf32>
    %c0_79 = arith.constant 0 : index
    %c0_80 = arith.constant 0 : index
    %103 = vector.load %arg7[%c0_79, %c0_80] : memref<1x16xf32, #tpu.memory_space<vmem>>, vector<1x16xf32>
    %104 = vector.broadcast %103 : vector<1x16xf32> to vector<2x16xf32>
    %105 = arith.addf %102, %104 : vector<2x16xf32>
    %cst_81 = arith.constant 2.000000e-01 : f32
    %106 = vector.broadcast %cst_81 : f32 to vector<2x16xf32>
    %107 = arith.mulf %106, %105 : vector<2x16xf32>
    %108 = arith.maximumf %105, %107 : vector<2x16xf32>
    %c0_82 = arith.constant 0 : index
    %c0_83 = arith.constant 0 : index
    %109 = vector.load %arg8[%c0_82, %c0_83] : memref<16x1xf32, #tpu.memory_space<vmem>>, vector<16x1xf32>
    %cst_84 = arith.constant dense<0.000000e+00> : vector<2x1xf32>
    %110 = tpu.matmul %108, %109, %cst_84 {dimension_numbers = #tpu.dot_dimension_numbers<[1], [0], [0], [1], [0, 0, 1, 1], [], []>} : vector<2x16xf32>, vector<16x1xf32>, vector<2x1xf32> -> vector<2x1xf32>
    %c0_85 = arith.constant 0 : index
    %c0_86 = arith.constant 0 : index
    %111 = vector.load %arg9[%c0_85, %c0_86] : memref<1x1xf32, #tpu.memory_space<vmem>>, vector<1x1xf32>
    %112 = vector.broadcast %111 : vector<1x1xf32> to vector<2x1xf32>
    %113 = arith.addf %110, %112 : vector<2x1xf32>
    %cst_87 = arith.constant 0.000000e+00 : f32
    %114 = vector.broadcast %cst_87 : f32 to vector<2x111xf32>
    %115 = tpu.concatenate %108, %113, %114 in 1 : vector<2x16xf32>, vector<2x1xf32>, vector<2x111xf32> -> vector<2x128xf32>
    %c0_88 = arith.constant 0 : index
    %c0_89 = arith.constant 0 : index
    %116 = vector.load %arg10[%c0_88, %c0_89] : memref<2x128xf32, #tpu.memory_space<vmem>>, vector<2x128xf32>
    tpu.vector_store %arg10[%c0_88, %c0_89], %115 {strides = array<i32>} : memref<2x128xf32, #tpu.memory_space<vmem>>, vector<2x128xf32>,
    return
  }
  func.func @transform_0(%arg0: i32) -> (i32, i32) {
    %c0_i32 = arith.constant 0 : i32
    %c0_i32_0 = arith.constant 0 : i32
    return %arg0, %c0_i32 : i32, i32
  }
  func.func @transform_1(%arg0: i32) -> (i32, i32) {
    %c0_i32 = arith.constant 0 : i32
    %c0_i32_0 = arith.constant 0 : i32
    %c0_i32_1 = arith.constant 0 : i32
    return %c0_i32, %c0_i32_0 : i32, i32
  }
  func.func @transform_2(%arg0: i32) -> (i32, i32) {
    %c0_i32 = arith.constant 0 : i32
    %c0_i32_0 = arith.constant 0 : i32
    %c0_i32_1 = arith.constant 0 : i32
    return %c0_i32, %c0_i32_0 : i32, i32
  }
  func.func @transform_3(%arg0: i32) -> (i32, i32) {
    %c0_i32 = arith.constant 0 : i32
    %c0_i32_0 = arith.constant 0 : i32
    %c0_i32_1 = arith.constant 0 : i32
    return %c0_i32, %c0_i32_0 : i32, i32
  }
  func.func @transform_4(%arg0: i32) -> (i32, i32) {
    %c0_i32 = arith.constant 0 : i32
    %c0_i32_0 = arith.constant 0 : i32
    %c0_i32_1 = arith.constant 0 : i32
    return %c0_i32, %c0_i32_0 : i32, i32
  }
  func.func @transform_5(%arg0: i32) -> (i32, i32) {
    %c0_i32 = arith.constant 0 : i32
    %c0_i32_0 = arith.constant 0 : i32
    %c0_i32_1 = arith.constant 0 : i32
    return %c0_i32, %c0_i32_0 : i32, i32
  }
  func.func @transform_6(%arg0: i32) -> (i32, i32) {
    %c0_i32 = arith.constant 0 : i32
    %c0_i32_0 = arith.constant 0 : i32
    %c0_i32_1 = arith.constant 0 : i32
    return %c0_i32, %c0_i32_0 : i32, i32
  }
  func.func @transform_7(%arg0: i32) -> (i32, i32) {
    %c0_i32 = arith.constant 0 : i32
    %c0_i32_0 = arith.constant 0 : i32
    %c0_i32_1 = arith.constant 0 : i32
    return %c0_i32, %c0_i32_0 : i32, i32
  }
  func.func @transform_8(%arg0: i32) -> (i32, i32) {
    %c0_i32 = arith.constant 0 : i32
    %c0_i32_0 = arith.constant 0 : i32
    %c0_i32_1 = arith.constant 0 : i32
    return %c0_i32, %c0_i32_0 : i32, i32
  }
  func.func @transform_9(%arg0: i32) -> (i32, i32) {
    %c0_i32 = arith.constant 0 : i32
    %c0_i32_0 = arith.constant 0 : i32
    return %arg0, %c0_i32 : i32, i32
  }
}

</mosaic_0001>

<bundles_post_ra>
// kernel: _lambda_.1
= control target key start
LH: loop header
LB: loop body
LE: loop exit
PB: predicated region body
PF: predicated region fallthrough
CT: control target
= control target key end

     0   :  { %vm46_vm0 = vcmask 64512   ;;  %vm152_vm1 = vcmask 130048   ;;  %v1086_v5 = vmov 0.0   ;;  %v1087_v6 = vmov 0.0|0.0   ;;  %s1088_s20 = smov 64   ;;  %s1089_s21 = smov 16   ;;  %s1678_s1 = inlined_call_operand.vmem [shape: f32[8,16], index: 1, kind: input, shape index: {}]   ;;  %s1679_s0 = inlined_call_operand.vmem [shape: f32[32,8], index: 0, kind: input, shape index: {}]   ;;  %s1680_s3 = inlined_call_operand.vmem [shape: f32[144,16], index: 3, kind: input, shape index: {}]   ;;  %s1681_s2 = inlined_call_operand.vmem [shape: f32[1,16], index: 2, kind: input, shape index: {}]   ;;  %s1682_s5 = inlined_call_operand.vmem [shape: f32[256,16], index: 5, kind: input, shape index: {}]   ;;  %s1683_s4 = inlined_call_operand.vmem [shape: f32[1,16], index: 4, kind: input, shape index: {}]   ;;  %s1684_s7 = inlined_call_operand.vmem [shape: f32[16,1], index: 7, kind: input, shape index: {}]   ;;  %s1685_s8 = inlined_call_operand.<no memory space> [shape: f32[1,1], index: 8, kind: input, shape index: {}]   ;;  %s1686_s6 = inlined_call_operand.vmem [shape: f32[1,16], index: 6, kind: input, shape index: {}]   ;;  %s1687_s9 = inlined_call_operand.vmem [shape: f32[2,128], index: 9, kind: output, shape index: {}]  }
   0x1   :  { %v38_v0 = vld [vmem:[%s1678_s1] sm:$0xff]  ;;  %v35_v2 = vld [vmem:[%s1679_s0 + $0x8] sm:$0xff]  ;;  %v36_v3 = vld [vmem:[%s1679_s0 + $0x10] sm:$0xff]  ;;  %153 = vst.msk [vmem:[#allocation2] sm:$0xff] %vm152_vm1, %v1086_v5  ;;  %924 = vmatprep.subr.bf16.mxu1 %v1087_v6  ;;  %v159_v19 = vlaneseq  ;;  %s1091_s26 = smov 32   ;;  %s1092_s10 = smov 96  }
   0x2   :  { %v34_v1 = vld [vmem:[%s1679_s0] sm:$0xff]  ;;  %909 = vmatprep.subr.mxu0 %v38_v0  ;;  %v37_v4 = vld [vmem:[%s1679_s0 + $0x18] sm:$0xff]  ;;  %154 = vst.msk [vmem:[#allocation2 + $0x28] sm:$0xff] %vm152_vm1, %v1086_v5  ;;  %v414_v8 = vld [vmem:[%s1680_s3 + $0x8] sm:$0xff]  ;;  %s1090_s0 = smov 48   ;;  %s1093_s14 = smov 80  }
   0x3   :  { %911 = vmatprep.mubr.msk.f32.mxu0 %vm46_vm0, %v34_v1  ;;  %910 = vmatpush3.msra.mxu0 %v38_v0  ;;  %v413_v7 = vld [vmem:[%s1680_s3] sm:$0xff]  ;;  %v415_v9 = vld [vmem:[%s1680_s3 + $0x10] sm:$0xff]  ;;  %v416_v11 = vld [vmem:[%s1680_s3 + $0x18] sm:$0xff]  ;;  %v160_v20 = vshrl.u32 %v159_v19, 7 }
   0x4   :  { %912 = vmatmul.mubr.msk.f32.vlgmr.msra.gmra.mrb[0].mxu0 %vm46_vm0, %v35_v2  ;;  %v925_v10 = vpack.c.bf16 %v414_v8, %v413_v7  ;;  %v928_v12 = vpack.c.bf16 %v416_v11, %v415_v9  ;;  %v417_v13 = vld [vmem:[%s1680_s3 + $0x20] sm:$0xff]  ;;  %v418_v14 = vld [vmem:[%s1680_s3 + $0x28] sm:$0xff]  ;;  %v419_v16 = vld [vmem:[%s1680_s3 + $0x30] sm:$0xff] }
   0x5   :  { %914 = vmatprep.mubr.msk.f32.mxu0 %vm46_vm0, %v36_v3  ;;  %v931_v15 = vpack.c.bf16 %v418_v14, %v417_v13  ;;  %v420_v17 = vld [vmem:[%s1680_s3 + $0x38] sm:$0xff]  ;;  %v161_v21 = vadd.s32 8, %v160_v20  ;;  %v853_v22 = vld [vmem:[%s1681_s2] ss:$0 sm:$0xff]  ;;  %v168_v24 = vshra.s32 %v160_v20, 2  ;;  %v164_v32 = vand.u32 3, %v160_v20 }
   0x6   :  { %926 = vmatpush1.bf16.msra.mxu1 %v925_v10  ;;  %v934_v18 = vpack.c.bf16 %v420_v17, %v419_v16  ;;  %v1213_v46 = vadd.s32 16, %v160_v20  ;;  %v421_v47 = vld [vmem:[%s1680_s3 + $0x40] sm:$0xff]  ;;  %v422_v48 = vld [vmem:[%s1680_s3 + $0x48] sm:$0xff]  ;;  %v1222_v50 = vadd.s32 24, %v160_v20  ;;  %v423_v59 = vld [vmem:[%s1680_s3 + $0x50] sm:$0xff] }
   0x7   :  { %927 = vmatprep.subr.bf16.mxu1 %v1087_v6  ;;  %v169_v27 = vshra.s32 %v161_v21, 2  ;;  %v1197_v33 = vand.u32 3, %v168_v24  ;;  %v165_v37 = vand.u32 3, %v161_v21  ;;  %vm1204_vm3 = vcmp.lt.s32.totalorder %v164_v32, 3  ;;  %v424_v60 = vld [vmem:[%s1680_s3 + $0x58] sm:$0xff] }
   0x8   :  { %915 = vmatmul.mubr.msk.f32.gmra.mrb[2].mxu0 %vm46_vm0, %v37_v4  ;;  %v937_v51 = vpack.c.bf16 %v422_v48, %v421_v47  ;;  %v170_v55 = vshra.s32 %v1213_v46, 2  ;;  %vm1252_vm10 = vcmp.ge.s32.totalorder %v164_v32, 1  ;;  %v171_v58 = vshra.s32 %v1222_v50, 2 }
   0x9   :  { %v1199_v38 = vand.u32 3, %v169_v27  ;;  %vm180_vm2 = vcmp.ge.s32.totalorder %v1197_v33, 1  ;;  %vm1209_vm5 = vcmp.lt.s32.totalorder %v165_v37, 3  ;;  %vm241_vm6 = vcmp.lt.s32.totalorder %v1197_v33, 3 }
   0xa   :  { %929 = vmatpush1.bf16.msra.mxu1 %v928_v12  ;;  %vm1229_vm7 = vmand %vm180_vm2, %vm1204_vm3  ;;  %vm1263_vm11 = vcmp.ge.s32.totalorder %v165_v37, 1  ;;  %v940_v1 = vpack.c.bf16 %v424_v60, %v423_v59  ;;  %v1278_v12 = vand.u32 3, %v170_v55  ;;  %v1293_v17 = vand.u32 3, %v171_v58 }
   0xb   :  { %930 = vmatprep.subr.bf16.mxu1 %v1087_v6  ;;  %vm181_vm4 = vcmp.ge.s32.totalorder %v1199_v38, 1  ;;  %vm1246_vm9 = vmand %vm241_vm6, %vm1204_vm3  ;;  %vm242_vm12 = vcmp.lt.s32.totalorder %v1199_v38, 3  ;;  %v166_v24 = vand.u32 3, %v1213_v46 }
   0xc   :  { %vm1238_vm8 = vmand %vm181_vm4, %vm1209_vm5  ;;  %vm182_vm15 = vcmp.ge.s32.totalorder %v1278_v12, 1  ;;  %vm1688_vm0 = vcmp.ge.s32.totalorder %v1293_v17, 1 }
   0xd   :  { %vm1289_vm13 = vmand %vm242_vm12, %vm1263_vm11 }
   0xe   :  { %932 = vmatpush1.bf16.msra.mxu1 %v931_v15  ;;  %vm1309_vm14 = vmand %vm241_vm6, %vm1252_vm10 }
   0xf   :  { %933 = vmatprep.subr.bf16.mxu1 %v1087_v6 }
  0x12   :  { %935 = vmatpush1.bf16.msra.mxu1 %v934_v18 }
  0x13   :  { %936 = vmatprep.subr.bf16.mxu1 %v1087_v6 }
  0x16   :  { %938 = vmatpush1.bf16.msra.mxu1 %v937_v51 }
  0x17   :  { %939 = vmatprep.subr.bf16.mxu1 %v1087_v6 }
  0x1a   :  { %941 = vmatpush1.bf16.msra.mxu1 %v940_v1 }
  0x1b   :  { %942 = vmatprep.subr.bf16.mxu1 %v1087_v6 }
  0xd7   :  { %v913_v23 = vpop.f32.mrb[0].mxu0 }
  0xd8   :  { %v131_v25 = vadd.f32 %v913_v23, %v853_v22  ;;  %v125_v26 = vpop.f32.mrb[1].mxu0 }
  0xd9   :  { %v126_v28 = vadd.f32 %v853_v22, %v125_v26 }
  0xda   :  { %v145_v29 = vmul.f32 0.2, %v131_v25 }
  0xdb   :  { %v144_v30 = vmul.f32 0.2, %v126_v28  ;;  %v916_v31 = vpop.f32.mrb[2].mxu0 }
  0xdc   :  { %v149_v34 = vmax.f32 %v131_v25, %v145_v29  ;;  %v141_v35 = vadd.f32 %v916_v31, %v853_v22  ;;  %v135_v36 = vpop.f32.mrb[3].mxu0 }
  0xdd   :  { %v148_v39 = vmax.f32 %v126_v28, %v144_v30  ;;  %v136_v40 = vadd.f32 %v853_v22, %v135_v36  ;;  %v167_v30 = vand.u32 3, %v1222_v50 }
  0xde   :  { %156 = vst.msk [vmem:[#allocation2 + $0x10] sm:$0xff] %vm152_vm1, %v149_v34  ;;  %v147_v41 = vmul.f32 0.2, %v141_v35  ;;  %v425_v34 = vld [vmem:[%s1680_s3 + $0x60] sm:$0xff] }
  0xdf   :  { %155 = vst.msk [vmem:[#allocation2 + $0x8] sm:$0xff] %vm152_vm1, %v148_v39  ;;  %v146_v42 = vmul.f32 0.2, %v136_v40 }
  0xe0   :  { %v151_v44 = vmax.f32 %v141_v35, %v147_v41  ;;  %v426_v35 = vld [vmem:[%s1680_s3 + $0x68] sm:$0xff]  ;;  %v427_v41 = vld [vmem:[%s1680_s3 + $0x70] sm:$0xff] }
  0xe1   :  { %v150_v49 = vmax.f32 %v136_v40, %v146_v42  ;;  %v428_v42 = vld [vmem:[%s1680_s3 + $0x78] sm:$0xff]  ;;  %v943_v51 = vpack.c.bf16 %v426_v35, %v425_v34 }
  0xe2   :  { %158 = vst.msk [vmem:[#allocation2 + $0x20] sm:$0xff] %vm152_vm1, %v151_v44  ;;  %v670_v44 = vld [vmem:[%s1682_s5 + $0xb0] sm:$0xff] }
  0xe3   :  { %157 = vst.msk [vmem:[#allocation2 + $0x18] sm:$0xff] %vm152_vm1, %v150_v49  ;;  %944 = vmatpush1.bf16.msra.mxu1 %v943_v51 }
  0xe4   :  { %945 = vmatprep.subr.bf16.mxu1 %v1087_v6 }
  0xe5   :  { %v229_v56 = vld [vmem:[#allocation2 + $0x10] sm:$0xff] }
  0xe6   :  { %v204_v61 = vld [vmem:[#allocation2 + $0x5] sm:$0xff]  ;;  %v205_v62 = vld [vmem:[#allocation2 + $0xd] sm:$0xff] }
  0xe7   :  { %v228_v63 = vld [vmem:[#allocation2 + $0x8] sm:$0xff]  ;;  %v263_v2 = vsel %vm1246_vm9, %v205_v62, 0.0  ;;  %v216_v18 = vsel %vm1229_vm7, %v204_v61, 0.0  ;;  %v217_v19 = vsel %vm1238_vm8, %v205_v62, 0.0  ;;  %vm1344_vm7 = vcmp.ge.s32.totalorder %v166_v24, 1  ;;  %v429_v61 = vld [vmem:[%s1680_s3 + $0x80] sm:$0xff] }
  0xe8   :  { %v996_v3 = vpack.i.bf16 %v229_v56, %v228_v63  ;;  %v196_v4 = vld [vmem:[#allocation2 + $0x4] sm:$0xff]  ;;  %v1270_v7 = vld [vmem:[#allocation2 + $0xc] sm:$0xff]  ;;  %859 = vmatprep.mubr.msk.f32.mxu1 %vm152_vm1, %v263_v2  ;;  %v1006_v26 = vpack.i.bf16 %v217_v19, %v216_v18  ;;  %vm1349_vm8 = vcmp.ge.s32.totalorder %v167_v30, 1  ;;  %vm1356_vm9 = vcmp.lt.s32.totalorder %v166_v24, 3 }
  0xe9   :  { %v220_v8 = vld [vmem:[#allocation2 + $0x7] sm:$0xff]  ;;  %v200_v9 = vsel %vm180_vm2, %v196_v4, 0.0  ;;  %v201_v10 = vsel %vm181_vm4, %v1270_v7, 0.0  ;;  %v221_v11 = vld [vmem:[#allocation2 + $0xf] sm:$0xff]  ;;  %v946_v56 = vpack.c.bf16 %v428_v42, %v427_v41 }
  0xea   :  { %997 = vrot.lane.b32.xlu1 %v996_v3, %s1088_s20  ;;  %v1001_v13 = vpack.i.bf16 %v201_v10, %v200_v9  ;;  %v224_v14 = vsel %vm1252_vm10, %v220_v8, 0.0  ;;  %v225_v15 = vsel %vm1263_vm11, %v221_v11, 0.0  ;;  %v1300_v20 = vld [vmem:[#allocation2 + $0x13] sm:$0xff]  ;;  %v1303_v22 = vld [vmem:[#allocation2 + $0xb] sm:$0xff]  ;;  %v231_v27 = vld [vmem:[#allocation2 + $0x20] sm:$0xff]  ;;  %v254_v10 = vsel %vm241_vm6, %v1270_v7, 0.0 }
  0xeb   :  { %v1011_v21 = vpack.i.bf16 %v225_v15, %v224_v14  ;;  %v250_v25 = vsel %vm1289_vm13, %v1300_v20, 0.0  ;;  %v198_v28 = vld [vmem:[#allocation2 + $0x14] sm:$0xff]  ;;  %v1320_v29 = vld [vmem:[#allocation2 + $0x1c] sm:$0xff]  ;;  %v249_v31 = vsel %vm1309_vm14, %v1303_v22, 0.0  ;;  %v232_v47 = vld [vmem:[#allocation2 + $0x9] sm:$0xff]  ;;  %vm1360_vm13 = vcmp.lt.s32.totalorder %v167_v30, 3  ;;  %947 = vmatpush1.bf16.msra.mxu1 %v946_v56 }
  0xec   :  { %1002 = vrot.lane.b32.xlu0 %v1001_v13, %s1089_s21  ;;  %v230_v32 = vld [vmem:[#allocation2 + $0x18] sm:$0xff]  ;;  %v1026_v36 = vpack.i.bf16 %v250_v25, %v249_v31  ;;  %v202_v39 = vsel %vm182_vm15, %v198_v28, 0.0  ;;  %v203_v40 = vsel %vm1688_vm0, %v1320_v29, 0.0  ;;  %v236_v58 = vsel %vm1204_vm3, %v232_v47, 0.0  ;;  %v430_v62 = vld [vmem:[%s1680_s3 + $0x88] sm:$0xff]  ;;  %vm1384_vm3 = vmand %vm182_vm15, %vm1356_vm9  ;;  %948 = vmatprep.subr.bf16.mxu1 %v1087_v6  ;;  %s1094_s3 = smov 112  }
  0xed   :  { %v233_v37 = vld [vmem:[#allocation2 + $0x11] sm:$0xff]  ;;  %v1016_v46 = vpack.i.bf16 %v231_v27, %v230_v32  ;;  %v223_v50 = vld [vmem:[#allocation2 + $0x1f] sm:$0xff]  ;;  %v1036_v53 = vpack.i.bf16 %v203_v40, %v202_v39  ;;  %v255_v63 = vsel %vm242_vm12, %v198_v28, 0.0  ;;  %vm1397_vm14 = vmand %vm1688_vm0, %vm1360_vm13  ;;  %v949_v9 = vpack.c.bf16 %v430_v62, %v429_v61 }
  0xee   :  { %1012 = vrot.lane.b32.xlu1 %v1011_v21, %s1090_s0  ;;  %v222_v49 = vld [vmem:[#allocation2 + $0x17] sm:$0xff]  ;;  %v237_v52 = vsel %vm1209_vm5, %v233_v37, 0.0  ;;  %v227_v60 = vsel %vm1349_vm8, %v223_v50, 0.0  ;;  %v1031_v11 = vpack.i.bf16 %v255_v63, %v254_v10  ;;  %vm1690_vm6 = vcmp.lt.s32.totalorder %v1278_v12, 3  ;;  %v240_v21 = vld [vmem:[#allocation2 + $0x23] sm:$0xff] }
  0xef   :  { %v226_v59 = vsel %vm1344_vm7, %v222_v49, 0.0  ;;  %v1021_v43 = vpack.i.bf16 %v237_v52, %v236_v58  ;;  %v1389_v3 = vld [vmem:[#allocation2 + $0x15] sm:$0xff]  ;;  %v1391_v4 = vld [vmem:[#allocation2 + $0x1d] sm:$0xff]  ;;  %950 = vmatpush1.bf16.msra.mxu1 %v949_v9  ;;  %vm1689_vm0 = vcmp.lt.s32.totalorder %v1293_v17, 3  ;;  %v256_v19 = vsel %vm1690_vm6, %v1320_v29, 0.0  ;;  %v653_v9 = vld [vmem:[%s1682_s5 + $0x28] sm:$0xff] }
  0xf0   :  { %1007 = vrot.lane.b32.xlu0 %v1006_v26, %s1091_s26  ;;  %v1046_v2 = vpack.i.bf16 %v227_v60, %v226_v59  ;;  %v234_v13 = vld [vmem:[#allocation2 + $0x19] sm:$0xff]  ;;  %v218_v14 = vsel %vm1384_vm3, %v1389_v3, 0.0  ;;  %v219_v15 = vsel %vm1397_vm14, %v1391_v4, 0.0  ;;  %vm247_vm3 = vmand %vm1690_vm6, %vm1344_vm7  ;;  %v235_v24 = vld [vmem:[#allocation2 + $0x21] sm:$0xff]  ;;  %vm388_vm6 = vcmask 392192  }
  0xf1   :  { %v238_v7 = vsel %vm1356_vm9, %v234_v13, 0.0  ;;  %v1041_v16 = vpack.i.bf16 %v219_v15, %v218_v14  ;;  %v1419_v18 = vld [vmem:[#allocation2 + $0x1b] sm:$0xff]  ;;  %vm248_vm14 = vmand %vm1689_vm0, %vm1349_vm8  ;;  %v239_v26 = vsel %vm1360_vm13, %v235_v24, 0.0  ;;  %v253_v27 = vld [vmem:[#allocation2 + $0x24] sm:$0xff] }
  0xf2   :  { %1027 = vrot.lane.b32.xlu1 %v1026_v36, %s1092_s10  ;;  %v251_v23 = vsel %vm247_vm3, %v1419_v18, 0.0  ;;  %v252_v25 = vsel %vm248_vm14, %v240_v21, 0.0  ;;  %v257_v28 = vsel %vm1689_vm0, %v253_v27, 0.0  ;;  %vm188_vm3 = vmand %vm180_vm2, %vm1252_vm10  ;;  %v176_v34 = vld [vmem:[#allocation2 + $0x3] sm:$0xff]  ;;  %vm383_vm14 = vcmask 261120  }
  0xf3   :  { %v192_v37 = vsel %vm188_vm3, %v176_v34, 0.0  ;;  %vm189_vm0 = vmand %vm181_vm4, %vm1263_vm11  ;;  %vm393_vm2 = vcmask 523264   ;;  %vm398_vm4 = vcmask 654336   ;;  %vm403_vm10 = vcmask 785408  }
  0xf4   :  { %1017 = vrot.lane.b32.xlu0 %v1016_v46, %s1088_s20  ;;  %v193_v47 = vsel %vm189_vm0, %v1303_v22, 0.0  ;;  %vm1465_vm11 = vmand %vm182_vm15, %vm1344_vm7  ;;  %vm408_vm0 = vcmask 916480   ;;  %vm1725_vm15 = vcmp.ge.s32.totalorder %v1293_v17, 1 }
  0xf5   :  { %vm1473_vm3 = vmand %vm242_vm12, %vm1209_vm5  ;;  %v194_v48 = vsel %vm1465_vm11, %v1300_v20, 0.0  ;;  %vm1728_vm5 = vcmp.lt.s32.totalorder %v1278_v12, 3 }
  0xf6   :  { %1037 = vrot.lane.b32.xlu1 %v1036_v53, %s1089_s21  ;;  %vm1481_vm7 = vmand %vm1725_vm15, %vm1349_vm8  ;;  %v264_v21 = vsel %vm1473_vm3, %v1389_v3, 0.0  ;;  %vm1731_vm8 = vcmp.lt.s32.totalorder %v1293_v17, 3 }
  0xf7   :  { %vm1504_vm12 = vmand %vm1728_vm5, %vm1356_vm9 }
  0xf8   :  { %1022 = vrot.lane.b32.xlu0 %v1021_v43, %s1093_s14  ;;  %v265_v34 = vsel %vm1504_vm12, %v1391_v4, 0.0  ;;  %vm262_vm9 = vmand %vm1731_vm8, %vm1360_vm13  ;;  %v668_v43 = vld [vmem:[%s1682_s5 + $0xa0] sm:$0xff]  ;;  %vm1095_vm13 = vmmov 0  }
  0xfa   :  { %1047 = vrot.lane.b32.xlu1 %v1046_v2, %s1090_s0 }
  0xfc   :  { %1032 = vrot.lane.b32.xlu0 %v1031_v11, %s1094_s3 }
  0xfe   :  { %339 = vrot.lane.b32.xlu1 %v238_v7, %s1093_s14 }
 0x100   :  { %1042 = vrot.lane.b32.xlu0 %v1041_v16, %s1091_s26 }
 0x102   :  { %371 = vrot.lane.b32.xlu1 %v256_v19, %s1094_s3 }
 0x104   :  { %355 = vrot.lane.b32.xlu0 %v251_v23, %s1092_s10  ;;  %v195_v23 = vsel %vm1481_vm7, %v1419_v18, 0.0 }
 0x106   :  { %357 = vrot.lane.b32.xlu1 %v252_v25, %s1092_s10 }
 0x108   :  { %341 = vrot.lane.b32.xlu0 %v239_v26, %s1093_s14 }
 0x10c   :  { %373 = vrot.lane.b32.xlu0 %v257_v28, %s1094_s3 }
 0x15c   :  { %v998_v29 = vpop.permute.xlu1 %997 }
 0x15d   :  { %v999_v51 = vunpack.i.l.bf16 %v998_v29  ;;  %v1000_v63 = vunpack.i.h.bf16 %v998_v29 }
 0x15e   :  { %v1003_v30 = vpop.permute.xlu0 %1002 }
 0x15f   :  { %v1004_v32 = vunpack.i.l.bf16 %v1003_v30  ;;  %v1005_v40 = vunpack.i.h.bf16 %v1003_v30 }
 0x160   :  { %v1013_v31 = vpop.permute.xlu1 %1012 }
 0x161   :  { %v379_v41 = vsel %vm152_vm1, %v192_v37, %v1004_v32  ;;  %v1014_v46 = vunpack.i.l.bf16 %v1013_v31  ;;  %v380_v50 = vsel %vm152_vm1, %v193_v47, %v1005_v40  ;;  %v1015_v56 = vunpack.i.h.bf16 %v1013_v31 }
 0x162   :  { %v1008_v35 = vpop.permute.xlu0 %1007 }
 0x163   :  { %v1009_v36 = vunpack.i.l.bf16 %v1008_v35  ;;  %v1010_v57 = vunpack.i.h.bf16 %v1008_v35 }
 0x164   :  { %v1028_v39 = vpop.permute.xlu1 %1027 }
 0x165   :  { %v384_v33 = vsel %vm383_vm14, %v379_v41, %v1009_v36  ;;  %v385_v52 = vsel %vm383_vm14, %v380_v50, %v1010_v57  ;;  %v1029_v1 = vunpack.i.l.bf16 %v1028_v39  ;;  %v1030_v16 = vunpack.i.h.bf16 %v1028_v39  ;;  %v258_v41 = vld [vmem:[#allocation2 + $0x25] sm:$0xff] }
 0x166   :  { %v1452_v42 = vpop.permute.xlu0 %1017  ;;  %v389_v0 = vsel %vm388_vm6, %v384_v33, %v1014_v46  ;;  %v390_v61 = vsel %vm388_vm6, %v385_v52, %v1015_v56  ;;  %v648_v52 = vld [vmem:[%s1682_s5] sm:$0xff]  ;;  %v649_v56 = vld [vmem:[%s1682_s5 + $0x8] sm:$0xff] }
 0x167   :  { %v394_v60 = vsel %vm393_vm2, %v389_v0, %v999_v51  ;;  %v395_v45 = vsel %vm393_vm2, %v390_v61, %v1000_v63  ;;  %v1019_v24 = vunpack.i.l.bf16 %v1452_v42  ;;  %v1020_v39 = vunpack.i.h.bf16 %v1452_v42  ;;  %v664_v0 = vld [vmem:[%s1682_s5 + $0x80] sm:$0xff]  ;;  %v665_v51 = vld [vmem:[%s1682_s5 + $0x88] sm:$0xff] }
 0x168   :  { %v1038_v49 = vpop.permute.xlu1 %1037  ;;  %v669_v63 = vld [vmem:[%s1682_s5 + $0xa8] sm:$0xff] }
 0x169   :  { %v1040_v10 = vunpack.i.h.bf16 %v1038_v49  ;;  %v1039_v11 = vunpack.i.l.bf16 %v1038_v49  ;;  %v266_v49 = vsel %vm262_vm9, %v258_v41, 0.0 }
 0x16a   :  { %v1023_v53 = vpop.permute.xlu0 %1022 }
 0x16b   :  { %v1024_v58 = vunpack.i.l.bf16 %v1023_v53  ;;  %v1025_v62 = vunpack.i.h.bf16 %v1023_v53  ;;  %v382_v3 = vsel %vm152_vm1, %v195_v23, %v1040_v10  ;;  %v381_v27 = vsel %vm152_vm1, %v194_v48, %v1039_v11  ;;  %v671_v10 = vld [vmem:[%s1682_s5 + $0xb8] sm:$0xff] }
 0x16c   :  { %v1048_v59 = vpop.permute.xlu1 %1047  ;;  %v951_v53 = vpack.c.bf16 %v665_v51, %v664_v0 }
 0x16d   :  { %v399_v22 = vsel %vm398_vm4, %v394_v60, %v1024_v58  ;;  %v400_v7 = vsel %vm398_vm4, %v395_v45, %v1025_v62  ;;  %v1049_v28 = vunpack.i.l.bf16 %v1048_v59  ;;  %v1050_v29 = vunpack.i.h.bf16 %v1048_v59  ;;  %v666_v58 = vld [vmem:[%s1682_s5 + $0x90] sm:$0xff]  ;;  %v667_v59 = vld [vmem:[%s1682_s5 + $0x98] sm:$0xff] }
 0x16e   :  { %v1033_v2 = vpop.permute.xlu0 %1032  ;;  %v404_v13 = vsel %vm403_vm10, %v399_v22, %v1029_v1  ;;  %v405_v18 = vsel %vm403_vm10, %v400_v7, %v1030_v16  ;;  %v953_v60 = vpack.c.bf16 %v649_v56, %v648_v52  ;;  %v955_v61 = vpack.c.bf16 %v667_v59, %v666_v58  ;;  %v650_v62 = vld [vmem:[%s1682_s5 + $0x10] sm:$0xff]  ;;  %v651_v22 = vld [vmem:[%s1682_s5 + $0x18] sm:$0xff]  ;;  %952 = vmatprep.subr.bf16.mxu0 %v951_v53  ;;  %v676_v56 = vld [vmem:[%s1682_s5 + $0xe0] sm:$0xff] }
 0x16f   :  { %v1034_v8 = vunpack.i.l.bf16 %v1033_v2  ;;  %v1035_v14 = vunpack.i.h.bf16 %v1033_v2  ;;  %v957_v1 = vpack.c.bf16 %v651_v22, %v650_v62  ;;  %v959_v2 = vpack.c.bf16 %v669_v63, %v668_v43  ;;  %v654_v45 = vld [vmem:[%s1682_s5 + $0x30] sm:$0xff]  ;;  %v659_v53 = vld [vmem:[%s1682_s5 + $0x58] sm:$0xff]  ;;  %v677_v58 = vld [vmem:[%s1682_s5 + $0xe8] sm:$0xff] }
 0x170   :  { %v340_v38 = vpop.permute.xlu1 %339  ;;  %954 = vmatpush3.bf16.msra.mxu0 %v953_v60  ;;  %v975_v22 = vpack.c.bf16 %v677_v58, %v676_v56  ;;  %v660_v43 = vld [vmem:[%s1682_s5 + $0x60] sm:$0xff]  ;;  %v661_v63 = vld [vmem:[%s1682_s5 + $0x68] sm:$0xff]  ;;  %v14_v58 = vstv %s1685_s8 }
 0x171   :  { %v409_v15 = vsel %vm408_vm0, %v404_v13, %v1034_v8  ;;  %v410_v54 = vsel %vm408_vm0, %v405_v18, %v1035_v14  ;;  %956 = vmatprep.subr.bf16.mxu0 %v955_v61  ;;  %v652_v8 = vld [vmem:[%s1682_s5 + $0x20] sm:$0xff]  ;;  %v963_v13 = vpack.c.bf16 %v671_v10, %v670_v44  ;;  %v655_v14 = vld [vmem:[%s1682_s5 + $0x38] sm:$0xff]  ;;  %v977_v10 = vpack.c.bf16 %v661_v63, %v660_v43 }
 0x172   :  { %v1043_v19 = vpop.permute.xlu0 %1042  ;;  %515 = vmatmul.mubr.f32.vlgmr.msra.gmra.mrb[0].mxu1 %v409_v15  ;;  %v961_v11 = vpack.c.bf16 %v653_v9, %v652_v8  ;;  %v858_v15 = vld [vmem:[%s1683_s4] ss:$0 sm:$0xff]  ;;  %v679_v8 = vld [vmem:[%s1682_s5 + $0xf8] sm:$0xff]  ;;  %15 = vst [vmem:[#allocation4] sm:$0x1] %v14_v58 }
 0x173   :  { %v1045_v25 = vunpack.i.h.bf16 %v1043_v19  ;;  %v1044_v26 = vunpack.i.l.bf16 %v1043_v19  ;;  %860 = vmatprep.mubr.msk.f32.mxu1 %vm152_vm1, %v264_v21 }
 0x174   :  { %v372_v35 = vpop.permute.xlu1 %371  ;;  %958 = vmatpush3.bf16.msra.mxu0 %v957_v1 }
 0x175   :  { %v386_v30 = vsel %vm383_vm14, %v381_v27, %v1044_v26  ;;  %v387_v31 = vsel %vm383_vm14, %v382_v3, %v1045_v25  ;;  %960 = vmatprep.subr.bf16.mxu0 %v959_v2  ;;  %v678_v2 = vld [vmem:[%s1682_s5 + $0xf0] sm:$0xff] }
 0x176   :  { %v356_v32 = vpop.permute.xlu0 %355  ;;  %v391_v12 = vsel %vm388_vm6, %v386_v30, %v1049_v28  ;;  %520 = vmatmul.mubr.f32.gmra.mrb[2].mxu1 %v410_v54  ;;  %v392_v37 = vsel %vm388_vm6, %v387_v31, %v1050_v29 }
 0x177   :  { %v396_v36 = vsel %vm393_vm2, %v391_v12, %v1019_v24  ;;  %861 = vmatprep.mubr.msk.f32.mxu1 %vm152_vm1, %v265_v34  ;;  %v397_v33 = vsel %vm393_vm2, %v392_v37, %v1020_v39  ;;  %v672_v34 = vld [vmem:[%s1682_s5 + $0xc0] sm:$0xff]  ;;  %v657_v39 = vld [vmem:[%s1682_s5 + $0x48] sm:$0xff] }
 0x178   :  { %v401_v40 = vsel %vm398_vm4, %v396_v36, %v340_v38  ;;  %v358_v42 = vpop.permute.xlu1 %357  ;;  %962 = vmatpush3.bf16.msra.mxu0 %v961_v11  ;;  %v965_v38 = vpack.c.bf16 %v655_v14, %v654_v45  ;;  %v656_v36 = vld [vmem:[%s1682_s5 + $0x40] sm:$0xff]  ;;  %v979_v45 = vpack.c.bf16 %v679_v8, %v678_v2  ;;  %v662_v14 = vld [vmem:[%s1682_s5 + $0x70] sm:$0xff] }
 0x179   :  { %v406_v57 = vsel %vm403_vm10, %v401_v40, %v356_v32  ;;  %964 = vmatprep.subr.bf16.mxu0 %v963_v13  ;;  %v969_v40 = vpack.c.bf16 %v657_v39, %v656_v36 }
 0x17a   :  { %v342_v4 = vpop.permute.xlu0 %341  ;;  %v411_v46 = vsel %vm408_vm0, %v406_v57, %v372_v35  ;;  %v673_v35 = vld [vmem:[%s1682_s5 + $0xc8] sm:$0xff] }
 0x17b   :  { %v402_v47 = vsel %vm398_vm4, %v397_v33, %v342_v4  ;;  %525 = vmatmul.mubr.f32.gmra.mrb[4].mxu1 %v411_v46  ;;  %v967_v37 = vpack.c.bf16 %v673_v35, %v672_v34  ;;  %v674_v4 = vld [vmem:[%s1682_s5 + $0xd0] sm:$0xff]  ;;  %v675_v33 = vld [vmem:[%s1682_s5 + $0xd8] sm:$0xff] }
 0x17c   :  { %862 = vmatprep.mubr.msk.f32.mxu1 %vm152_vm1, %v266_v49  ;;  %v407_v55 = vsel %vm403_vm10, %v402_v47, %v358_v42  ;;  %966 = vmatpush3.bf16.msra.mxu0 %v965_v38  ;;  %v971_v49 = vpack.c.bf16 %v675_v33, %v674_v4  ;;  %v663_v38 = vld [vmem:[%s1682_s5 + $0x78] sm:$0xff] }
 0x17d   :  { %968 = vmatprep.subr.bf16.mxu0 %v967_v37 }
 0x17e   :  { %v374_v50 = vpop.permute.xlu0 %373 }
 0x17f   :  { %v412_v17 = vsel %vm408_vm0, %v407_v55, %v374_v50  ;;  %v658_v55 = vld [vmem:[%s1682_s5 + $0x50] sm:$0xff] }
 0x180   :  { %530 = vmatmul.mubr.f32.gmra.mrb[6].mxu1 %v412_v17  ;;  %970 = vmatpush3.bf16.msra.mxu0 %v969_v40  ;;  %v973_v62 = vpack.c.bf16 %v659_v53, %v658_v55  ;;  %v760_v53 = vld [vmem:[%s1684_s7 + $0x8] sm:$0xff] }
 0x181   :  { %972 = vmatprep.subr.bf16.mxu0 %v971_v49 }
 0x184   :  { %974 = vmatpush3.bf16.msra.mxu0 %v973_v62 }
 0x185   :  { %976 = vmatprep.subr.bf16.mxu0 %v975_v22 }
 0x188   :  { %978 = vmatpush3.bf16.msra.mxu0 %v977_v10 }
 0x189   :  { %980 = vmatprep.subr.bf16.mxu0 %v979_v45 }
 0x245   :  { %v516_v7 = vpop.f32.mrb[0].mxu1 }
 0x246   :  { %v517_v48 = vadd.f32 %v858_v15, %v516_v7  ;;  %v518_v16 = vpop.f32.mrb[1].mxu1 }
 0x248   :  { %v535_v19 = vmul.f32 0.2, %v517_v48 }
 0x249   :  { %v521_v21 = vpop.f32.mrb[2].mxu1 }
 0x24a   :  { %v539_v23 = vmax.f32 %v517_v48, %v535_v19  ;;  %v522_v24 = vadd.f32 %v858_v15, %v521_v21  ;;  %v523_v25 = vpop.f32.mrb[3].mxu1  ;;  %v981_v48 = vpack.c.bf16 %v663_v38, %v662_v14 }
 0x24c   :  { %543 = vst.msk [vmem:[#allocation3] sm:$0xff] %vm152_vm1, %v539_v23  ;;  %v536_v26 = vmul.f32 0.2, %v522_v24  ;;  %982 = vmatpush3.bf16.msra.mxu0 %v981_v48 }
 0x24d   :  { %983 = vmatprep.subr.bf16.mxu0 %v1087_v6 }
 0x24e   :  { %v540_v20 = vmax.f32 %v522_v24, %v536_v26  ;;  %v526_v3 = vpop.f32.mrb[4].mxu1 }
 0x24f   :  { %v527_v27 = vadd.f32 %v858_v15, %v526_v3  ;;  %v528_v28 = vpop.f32.mrb[5].mxu1 }
 0x250   :  { %544 = vst.msk [vmem:[#allocation3 + $0x8] sm:$0xff] %vm152_vm1, %v540_v20 }
 0x251   :  { %v537_v18 = vmul.f32 0.2, %v527_v27 }
 0x253   :  { %v541_v29 = vmax.f32 %v527_v27, %v537_v18  ;;  %v531_v30 = vpop.f32.mrb[6].mxu1 }
 0x254   :  { %v532_v31 = vadd.f32 %v858_v15, %v531_v30  ;;  %v533_v54 = vpop.f32.mrb[7].mxu1 }
 0x255   :  { %545 = vst.msk [vmem:[#allocation3 + $0x10] sm:$0xff] %vm152_vm1, %v541_v29 }
 0x256   :  { %v538_v32 = vmul.f32 0.2, %v532_v31 }
 0x258   :  { %v542_v12 = vmax.f32 %v532_v31, %v538_v32 }
 0x25a   :  { %546 = vst.msk [vmem:[#allocation3 + $0x18] sm:$0xff] %vm152_vm1, %v542_v12 }
 0x25c   :  { %v551_v41 = vld [vmem:[#allocation3 + $0x2] ss:$16 sm:$0x3]  ;;  %v549_v57 = vld [vmem:[#allocation3 + $0x1] ss:$16 sm:$0x3] }
 0x25d   :  { %v555_v51 = vld [vmem:[#allocation3 + $0x4] ss:$16 sm:$0x3]  ;;  %v553_v52 = vld [vmem:[#allocation3 + $0x3] ss:$16 sm:$0x3] }
 0x25e   :  { %v559_v9 = vld [vmem:[#allocation3 + $0x6] ss:$16 sm:$0x3]  ;;  %v557_v44 = vld [vmem:[#allocation3 + $0x5] ss:$16 sm:$0x3] }
 0x25f   :  { %v561_v7 = vld [vmem:[#allocation3 + $0x7] ss:$16 sm:$0x3]  ;;  %v547_v3 = vld [vmem:[#allocation3] ss:$16 sm:$0x3] }
 0x261   :  { %v567_v46 = vld [vmem:[#allocation3 + $0xa] ss:$16 sm:$0x3]  ;;  %v565_v47 = vld [vmem:[#allocation3 + $0x9] ss:$16 sm:$0x3] }
 0x262   :  { %v1056_v42 = vpack.i.bf16 %v551_v41, %v567_v46  ;;  %v1051_v50 = vpack.i.bf16 %v549_v57, %v565_v47  ;;  %v571_v17 = vld [vmem:[#allocation3 + $0xc] ss:$16 sm:$0x3]  ;;  %v569_v0 = vld [vmem:[#allocation3 + $0xb] ss:$16 sm:$0x3] }
 0x263   :  { %v1066_v59 = vpack.i.bf16 %v555_v51, %v571_v17  ;;  %v1061_v60 = vpack.i.bf16 %v553_v52, %v569_v0  ;;  %v575_v61 = vld [vmem:[#allocation3 + $0xe] ss:$16 sm:$0x3]  ;;  %v573_v1 = vld [vmem:[#allocation3 + $0xd] ss:$16 sm:$0x3] }
 0x264   :  { %1057 = vrot.lane.b32.xlu0 %v1056_v42, %s1091_s26  ;;  %1052 = vrot.lane.b32.xlu1 %v1051_v50, %s1089_s21  ;;  %v1076_v11 = vpack.i.bf16 %v559_v9, %v575_v61  ;;  %v1071_v13 = vpack.i.bf16 %v557_v44, %v573_v1  ;;  %v577_v15 = vld [vmem:[#allocation3 + $0xf] ss:$16 sm:$0x3]  ;;  %v563_v20 = vld [vmem:[#allocation3 + $0x8] ss:$16 sm:$0x3] }
 0x265   :  { %v1081_v16 = vpack.i.bf16 %v561_v7, %v577_v15  ;;  %v759_v52 = vld [vmem:[%s1684_s7] sm:$0xff] }
 0x266   :  { %v984_v56 = vpack.c.bf16 %v760_v53, %v759_v52 }
 0x268   :  { %1067 = vrot.lane.b32.xlu0 %v1066_v59, %s1088_s20  ;;  %1062 = vrot.lane.b32.xlu1 %v1061_v60, %s1090_s0  ;;  %v863_v60 = vld [vmem:[%s1686_s6] ss:$0 sm:$0xff] }
 0x26c   :  { %1077 = vrot.lane.b32.xlu0 %v1076_v11, %s1092_s10  ;;  %1072 = vrot.lane.b32.xlu1 %v1071_v13, %s1093_s14 }
 0x270   :  { %1082 = vrot.lane.b32.xlu1 %v1081_v16, %s1094_s3 }
 0x2d6   :  { %v1058_v19 = vpop.permute.xlu0 %1057  ;;  %v1053_v21 = vpop.permute.xlu1 %1052 }
 0x2d7   :  { %v1055_v23 = vunpack.i.h.bf16 %v1053_v21  ;;  %v1054_v24 = vunpack.i.l.bf16 %v1053_v21  ;;  %v1060_v25 = vunpack.i.h.bf16 %v1058_v19  ;;  %v1059_v26 = vunpack.i.l.bf16 %v1058_v19 }
 0x2d9   :  { %v634_v27 = vsel %vm152_vm1, %v547_v3, %v1055_v23  ;;  %v641_v28 = vsel %vm152_vm1, %v563_v20, %v1054_v24 }
 0x2da   :  { %v1068_v18 = vpop.permute.xlu0 %1067  ;;  %v1063_v29 = vpop.permute.xlu1 %1062  ;;  %v635_v6 = vsel %vm383_vm14, %v634_v27, %v1060_v25  ;;  %v642_v12 = vsel %vm383_vm14, %v641_v28, %v1059_v26 }
 0x2db   :  { %v1065_v30 = vunpack.i.h.bf16 %v1063_v29  ;;  %v1064_v31 = vunpack.i.l.bf16 %v1063_v29  ;;  %v1070_v54 = vunpack.i.h.bf16 %v1068_v18  ;;  %v1069_v32 = vunpack.i.l.bf16 %v1068_v18 }
 0x2dd   :  { %v636_v34 = vsel %vm388_vm6, %v635_v6, %v1065_v30  ;;  %v643_v35 = vsel %vm388_vm6, %v642_v12, %v1064_v31  ;;  %vm846_vm6 = vcmask 138240  }
 0x2de   :  { %v1078_v36 = vpop.permute.xlu0 %1077  ;;  %v1073_v37 = vpop.permute.xlu1 %1072  ;;  %v637_v4 = vsel %vm393_vm2, %v636_v34, %v1070_v54  ;;  %v644_v33 = vsel %vm393_vm2, %v643_v35, %v1069_v32 }
 0x2df   :  { %v1075_v39 = vunpack.i.h.bf16 %v1073_v37  ;;  %v1074_v40 = vunpack.i.l.bf16 %v1073_v37  ;;  %v1080_v41 = vunpack.i.h.bf16 %v1078_v36  ;;  %v1079_v57 = vunpack.i.l.bf16 %v1078_v36 }
 0x2e1   :  { %v638_v46 = vsel %vm398_vm4, %v637_v4, %v1075_v39  ;;  %v645_v47 = vsel %vm398_vm4, %v644_v33, %v1074_v40 }
 0x2e2   :  { %v1083_v49 = vpop.permute.xlu1 %1082  ;;  %v639_v55 = vsel %vm403_vm10, %v638_v46, %v1080_v41  ;;  %v646_v17 = vsel %vm403_vm10, %v645_v47, %v1079_v57 }
 0x2e3   :  { %v1085_v42 = vunpack.i.h.bf16 %v1083_v49  ;;  %v1084_v50 = vunpack.i.l.bf16 %v1083_v49 }
 0x2e5   :  { %v640_v0 = vsel %vm408_vm0, %v639_v55, %v1085_v42  ;;  %v647_v51 = vsel %vm408_vm0, %v646_v17, %v1084_v50 }
 0x2e6   :  { %751 = vmatprep.mubr.f32.mxu0 %v647_v51 }
 0x2e7   :  { %752 = vmatmul.mubr.f32.vlgmr.msra.gmra.mrb[4].mxu0 %v640_v0 }
 0x2e8   :  { %921 = vmatprep.mubr.msk.f32.mxu0 %vm1095_vm13, %v1086_v5  ;;  %985 = vmatpush3.bf16.msra.mxu0 %v984_v56  ;;  %v864_v5 = vld [vmem:[#allocation4] ss:$0 sm:$0xff] }
 0x3ba   :  { %v903_v59 = vpop.f32.mrb[4].mxu0 }
 0x3bb   :  { %v904_v61 = vpop.f32.mrb[5].mxu0 }
 0x3bc   :  { %v905_v62 = vadd.f32 %v904_v61, %v903_v59 }
 0x3be   :  { %v754_v22 = vadd.f32 %v905_v62, %v863_v60 }
 0x3c0   :  { %v757_v43 = vmul.f32 0.2, %v754_v22 }
 0x3c2   :  { %v758_v63 = vmax.f32 %v754_v22, %v757_v43 }
 0x3c4   :  { %922 = vmatmul.mubr.msk.f32.vlgmr.msra.gmra.mrb[6].mxu0 %vm152_vm1, %v758_v63 }
 0x497   :  { %v837_v1 = vpop.f32.mrb[6].mxu0 }
 0x498   :  { %v838_v2 = vadd.f32 %v864_v5, %v837_v1  ;;  %v923_v8 = vpop.f32.mrb[7].mxu0 }
 0x49a   :  { %842 = vrot.lane.b32.xlu0 %v838_v2, %s1089_s21 }
 0x50c   :  { %v843_v9 = vpop.permute.xlu0 %842 }
 0x50d   :  { %v845_v44 = vsel %vm152_vm1, %v758_v63, %v843_v9 }
 0x50e   :  { %v847_v10 = vsel %vm846_vm6, %v845_v44, 0.0 }
 0x50f   :  { %848 = vst [vmem:[%s1687_s9] sm:$0x3] %v847_v10 }

</bundles_post_ra>
